<compile_context>
chip_gen: v5e
topology: v5e:2x2
jax: 0.10.0
libtpu: 0.0.40
codegen_flags: <defaults>
</compile_context>

<pallas_src>
import functools
import math

import jax
import jax.numpy as jnp
from jax.experimental import pallas as pl
from jax.experimental.pallas import tpu as pltpu


def _cosnorm_kernel(x_ref, w_ref, inv_wn_ref, out_ref, *, scale, mm_dtype):
    x = x_ref[...].astype(jnp.float32)                                 # (TB, in_dims)

    # scale * norm/(1+norm) * x/norm  ==  x * (scale / (1 + norm))  for norm > 0.
    # Single fused per-row factor; the reciprocal goes to the EUP slot (co-issues
    # with VALU/MXU work).
    norm_x = jnp.sqrt(jnp.sum(x * x, axis=1, keepdims=True))           # (TB, 1)
    ex_scaled = x * (scale * pl.reciprocal(1.0 + norm_x, approx=True))

    # Weight tile kept in the original (out_dims, in_dims) layout: contract over
    # in_dims of BOTH operands (transposed-RHS matmul, handled natively by the MXU).
    out = jax.lax.dot_general(
        ex_scaled.astype(mm_dtype), w_ref[...].astype(mm_dtype),
        dimension_numbers=(((1,), (1,)), ((), ())),
        preferred_element_type=jnp.float32)                            # (TB, TN)

    # Per-class normalization (precomputed once in the wrapper): scale result columns.
    out_ref[...] = (out * inv_wn_ref[...]).astype(out_ref.dtype)


def _round_down(v, m):
    return max(m, (v // m) * m)


@functools.partial(
    jax.jit, static_argnames=("scale", "batch_tile", "out_tile", "matmul_dtype"))
def cosnorm_classifier_forward(x, weight, *, scale=16.0, batch_tile=None,
                               out_tile=None, matmul_dtype=None):
    """x: (B, in_dims); weight: (out_dims, in_dims), PyTorch Linear layout."""
    B, in_dims = x.shape
    out_dims, in_dims_w = weight.shape
    assert in_dims_w == in_dims, (weight.shape, x.shape)

    # ---- hoisted per-class weight normalization: 1/||w_row||, shape (1, out_dims) ----
    w32 = weight.astype(jnp.float32)
    inv_w_norm = jax.lax.rsqrt(jnp.sum(w32 * w32, axis=1))[None, :]

    # ---- tile sizes -----------------------------------------------------------------
    tb = min(B, 256) if batch_tile is None else min(int(batch_tile), B)
    if tb != B:
        tb = _round_down(tb, 8)
        assert tb % 8 == 0          # (8,128) sublane constraint on the x / out blocks
    tn = min(out_dims, 512) if out_tile is None else min(int(out_tile), out_dims)
    if tn != out_dims:
        tn = _round_down(tn, 128)
        assert tn % 128 == 0        # lane-dense (unmasked) output stores
    # NOTE: in_dims is never tiled (block dim == full array dim, so <128 lanes is OK);
    # tiling it in the future requires multiples of 128 plus a K-reduction grid axis.

    mm_dtype = jnp.dtype(jnp.float32) if matmul_dtype is None else jnp.dtype(matmul_dtype)

    # Grid: out tiles outer, batch innermost -> the weight tile's block index is
    # constant across consecutive steps, so Pallas keeps it resident (no re-DMA).
    grid = (pl.cdiv(out_dims, tn), pl.cdiv(B, tb))

    # ---- scoped VMEM budget: double-buffered tiles + f32 temps, with headroom --------
    def nbytes(shape, dtype):
        return math.prod(shape) * jnp.dtype(dtype).itemsize

    tile_bytes = (2 * nbytes((tb, in_dims), x.dtype)            # x tile (double-buffered)
                  + 2 * nbytes((tn, in_dims), weight.dtype)     # weight tile
                  + 2 * nbytes((8, tn), jnp.float32)            # inv_w_norm (sublane-padded)
                  + 2 * nbytes((tb, tn), x.dtype)               # output tile
                  + 2 * nbytes((tb, max(in_dims, tn)), jnp.float32))  # in-kernel f32 temps
    vmem_limit = max(32 << 20, min(int(tile_bytes * 1.5) + (1 << 20), 64 << 20))

    kernel = functools.partial(_cosnorm_kernel, scale=float(scale), mm_dtype=mm_dtype)

    return pl.pallas_call(
        kernel,
        out_shape=jax.ShapeDtypeStruct((B, out_dims), x.dtype),
        grid=grid,
        in_specs=[
            pl.BlockSpec((tb, in_dims), lambda j, i: (i, 0)),   # x: follows batch step
            pl.BlockSpec((tn, in_dims), lambda j, i: (j, 0)),   # weight: resident across batch
            pl.BlockSpec((1, tn), lambda j, i: (0, j)),         # 1/||w_row|| per out tile
        ],
        out_specs=pl.BlockSpec((tb, tn), lambda j, i: (i, j)),
        compiler_params=pltpu.CompilerParams(
            dimension_semantics=("parallel", "parallel"),
            vmem_limit_bytes=vmem_limit),
    )(x, weight, inv_w_norm)


def _reference(x, weight, scale=16.0):
    """Pure-JAX replica of the PyTorch forward (same formula, same order)."""
    norm_x = jnp.linalg.norm(x, ord=2, axis=1, keepdims=True)
    ex = norm_x / (1.0 + norm_x) * (x / norm_x)
    ew = weight / jnp.linalg.norm(weight, ord=2, axis=1, keepdims=True)
    return (scale * ex) @ ew.T


if __name__ == "__main__":
    # Small, TPU-friendly shapes: 8-aligned batch, lane-dense out_dims.
    B, in_dims, out_dims = 64, 64, 256
    scale = 16.0

    k_x, k_w = jax.random.split(jax.random.PRNGKey(0))
    x = jax.random.normal(k_x, (B, in_dims), jnp.float32)
    stdv = 1.0 / math.sqrt(in_dims)   # reset_parameters(): U(-1/sqrt(in), 1/sqrt(in))
    weight = jax.random.uniform(k_w, (out_dims, in_dims), jnp.float32, -stdv, stdv)

    ref = _reference(x, weight, scale)

    # (1) f32 MXU operands with explicit small tiles so the demo exercises a real
    #     multi-step (2 x 4) grid: weight residency across batch steps, tiled outputs.
    out = cosnorm_classifier_forward(x, weight, scale=scale, batch_tile=16, out_tile=128)
    out = jax.block_until_ready(out)
    assert out.shape == (B, out_dims)
    err = float(jnp.max(jnp.abs(out - ref)))
    assert jnp.allclose(out, ref, atol=1e-2, rtol=1e-2), f"f32 max abs err {err}"

    # (2) bf16 MXU operands (f32 accumulation), default tiling — the compute-bound
    #     configuration recommended for v6e/v7x heads.
    out_bf16 = cosnorm_classifier_forward(x, weight, scale=scale, matmul_dtype="bfloat16")
    out_bf16 = jax.block_until_ready(out_bf16)
    err_bf16 = float(jnp.max(jnp.abs(out_bf16 - ref)))
    assert jnp.allclose(out_bf16, ref, atol=1e-1, rtol=1e-1), f"bf16 max abs err {err_bf16}"

    print("KERNEL_OK")
</pallas_src>

<mosaic_0001>
module attributes {stable_mosaic.version = 11 : i64} {
  func.func @_cosnorm_kernel(%arg0: i32, %arg1: i32, %arg2: memref<16x64xf32, #tpu.memory_space<vmem>>, %arg3: memref<128x64xf32, #tpu.memory_space<vmem>>, %arg4: memref<1x128xf32, #tpu.memory_space<vmem>>, %arg5: memref<16x128xf32, #tpu.memory_space<vmem>>) attributes {dimension_semantics = [#tpu.dimension_semantics<parallel>, #tpu.dimension_semantics<parallel>], iteration_bounds = array<i64: 2, 4>, scalar_prefetch = 0 : i64, scratch_operands = 0 : i64, tpu.core_type = #tpu.core_type<tc>, window_params = [{transform_indices = @transform_0, window_bounds = array<i64: 16, 64>}, {transform_indices = @transform_1, window_bounds = array<i64: 128, 64>}, {transform_indices = @transform_2, window_bounds = array<i64: 1, 128>}, {transform_indices = @transform_3, window_bounds = array<i64: 16, 128>}]} {
    %c0 = arith.constant 0 : index
    %c0_0 = arith.constant 0 : index
    %0 = vector.load %arg2[%c0, %c0_0] : memref<16x64xf32, #tpu.memory_space<vmem>>, vector<16x64xf32>
    %1 = arith.mulf %0, %0 : vector<16x64xf32>
    %cst = arith.constant dense<0.000000e+00> : vector<16xf32>
    %2 = vector.multi_reduction <add>, %1, %cst [1] : vector<16x64xf32> to vector<16xf32>
    %3 = vector.shape_cast %2 : vector<16xf32> to vector<16x1xf32>
    %4 = math.sqrt %3 : vector<16x1xf32>
    %cst_1 = arith.constant 1.000000e+00 : f32
    %5 = vector.broadcast %cst_1 : f32 to vector<16x1xf32>
    %6 = arith.addf %5, %4 : vector<16x1xf32>
    %7 = tpu.reciprocal %6 {approx = true} : vector<16x1xf32> -> vector<16x1xf32>
    %cst_2 = arith.constant 1.600000e+01 : f32
    %8 = vector.broadcast %cst_2 : f32 to vector<16x1xf32>
    %9 = arith.mulf %8, %7 : vector<16x1xf32>
    %10 = vector.broadcast %9 : vector<16x1xf32> to vector<16x64xf32>
    %11 = arith.mulf %0, %10 : vector<16x64xf32>
    %c0_3 = arith.constant 0 : index
    %c0_4 = arith.constant 0 : index
    %12 = vector.load %arg3[%c0_3, %c0_4] : memref<128x64xf32, #tpu.memory_space<vmem>>, vector<128x64xf32>
    %cst_5 = arith.constant dense<0.000000e+00> : vector<16x128xf32>
    %13 = tpu.matmul %11, %12, %cst_5 {dimension_numbers = #tpu.dot_dimension_numbers<[1], [1], [0], [0], [0, 0, 1, 0], [], []>} : vector<16x64xf32>, vector<128x64xf32>, vector<16x128xf32> -> vector<16x128xf32>
    %c0_6 = arith.constant 0 : index
    %c0_7 = arith.constant 0 : index
    %14 = vector.load %arg4[%c0_6, %c0_7] : memref<1x128xf32, #tpu.memory_space<vmem>>, vector<1x128xf32>
    %15 = vector.broadcast %14 : vector<1x128xf32> to vector<16x128xf32>
    %16 = arith.mulf %13, %15 : vector<16x128xf32>
    %c0_8 = arith.constant 0 : index
    %c0_9 = arith.constant 0 : index
    %17 = vector.load %arg5[%c0_8, %c0_9] : memref<16x128xf32, #tpu.memory_space<vmem>>, vector<16x128xf32>
    tpu.vector_store %arg5[%c0_8, %c0_9], %16 {strides = array<i32>} : memref<16x128xf32, #tpu.memory_space<vmem>>, vector<16x128xf32>,
    return
  }
  func.func @transform_0(%arg0: i32, %arg1: i32) -> (i32, i32) {
    %c0_i32 = arith.constant 0 : i32
    %c0_i32_0 = arith.constant 0 : i32
    return %arg1, %c0_i32 : i32, i32
  }
  func.func @transform_1(%arg0: i32, %arg1: i32) -> (i32, i32) {
    %c0_i32 = arith.constant 0 : i32
    %c0_i32_0 = arith.constant 0 : i32
    return %arg0, %c0_i32 : i32, i32
  }
  func.func @transform_2(%arg0: i32, %arg1: i32) -> (i32, i32) {
    %c0_i32 = arith.constant 0 : i32
    %c0_i32_0 = arith.constant 0 : i32
    return %c0_i32, %arg0 : i32, i32
  }
  func.func @transform_3(%arg0: i32, %arg1: i32) -> (i32, i32) {
    %c0_i32 = arith.constant 0 : i32
    return %arg1, %arg0 : i32, i32
  }
}

</mosaic_0001>

<bundles_post_ra>
// kernel: cosnorm_classifier_forward.1
= control target key start
LH: loop header
LB: loop body
LE: loop exit
PB: predicated region body
PF: predicated region fallthrough
CT: control target
= control target key end

     0   :  { %8 = vsyncpa [#allocation3], 0  ;;  %s933_s0 = inlined_call_operand.vmem [shape: f32[64,64], index: 0, kind: input, shape index: {}]   ;;  %s934_s1 = inlined_call_operand.vmem [shape: f32[256,64], index: 1, kind: input, shape index: {}]   ;;  %s935_s2 = inlined_call_operand.vmem [shape: f32[1,256], index: 2, kind: input, shape index: {}]   ;;  %s936_s3 = inlined_call_operand.hbm [shape: f32[64,256], index: 3, kind: output, shape index: {}]  }
   0x1   :  { %10 = vsyncpa [#allocation3 + $0x1], 0  ;;  %s733_s12 = smov 0   ;;  %s735_s13 = smov 0  }
   0x2   :  { %s737_s14 = smov 0   ;;  %s739_s15 = smov 0  }
   0x3   :  { %s741_s16 = smov 0   ;;  %s743_s17 = smov 0  }
   0x4   :  { %s745_s18 = smov 0   ;;  %s747_s19 = smov 0  }
   0x5 LB: > { %s480_s20 = sadd.s32 4294967295, %s708_s19   ;;  %s481_s21 = sadd.s32 4294967294, %s708_s19   ;;  %s708_s19 = sphi %s747_s19, %s16_s19   ;;  %s704_s18 = sphi %s745_s18, %s945_s18   ;;  %s700_s17 = sphi %s743_s17, %s944_s17   ;;  %s696_s16 = sphi %s741_s16, %s943_s16   ;;  %s692_s15 = sphi %s739_s15, %s942_s15   ;;  %s688_s14 = sphi %s737_s14, %s941_s14   ;;  %s684_s13 = sphi %s735_s13, %s940_s13   ;;  %s680_s12 = sphi %s733_s12, %s939_s12  }
   0x6   : > { %s25_s22 = sadd.s32 1, %s700_s17  ;;  %s28_s23 = sadd.s32 1, %s704_s18 }
   0x7   : > { %p26_p0 = scmp.ge.s32.totalorder %s25_s22, 4  ;;  %p125_p1 = scmp.ne.s32.totalorder %s688_s14, %s684_s13 }
   0x8   : > { %p126_p2 = scmp.eq.s32.totalorder %s480_s20, 7  ;;  %p131_p5 = scmp.ne.s32.totalorder %s684_s13, %s680_s12 }
   0x9   : > { %s947_s22 = smov (%p26_p0, %s25_s22), 0  ;;  %s949_s23 = smov (!%p26_p0, %s28_s23), %s704_s18 }
   0xa   : > { %s110_s24 = ssub.s32 %s700_s17, %s947_s22  ;;  %p784_p3 = por %p126_p2, %p125_p1 }
   0xb   : > { %p30_p4 = scmp.ge.s32.totalorder %s949_s23, 2  ;;  %p132_p6 = scmp.eq.s32.totalorder %s481_s21, 7 }
   0xc   : > { %p484_p7 = scmp.ge.s32.totalorder %s708_s19, 1  ;;  %p174_p9 = scmp.lt.s32.totalorder %s708_s19, 9 }
   0xd   : > { %s951_s23 = smov (%p30_p4, %s949_s23), 0  ;;  %p793_p8 = por %p132_p6, %p131_p5 }
   0xe   : > { %s111_s27 = ssub.s32 %s704_s18, %s951_s23  ;;  %s115_s28 = sadd.s32 1, %s688_s14 }
   0xf   : > { %s112_s29 = sor.u32 %s111_s27, %s110_s24  ;;  %p175_p10 = pnand %p484_p7, %p174_p9 }
  0x10   : > { %p113_p11 = scmp.eq.s32.totalorder %s112_s29, 0  ;;  %s486_s4 = sshll.u32 (!%p175_p10), %s692_s15, 1 }
  0x11   : > { %178 = sbr.rel (%p175_p10) target bundleno = 320 (0x140), region = 32  ;;  %s488_s5 = sshll.u32 (!%p175_p10), %s696_s16, 4 }
  0x12   : > { %s802_s30 = scalar_select %p113_p11, %s688_s14, %s115_s28  }
  0x13   : > { %p207_p12 = scmp.lt.s32.totalorder (!%p175_p10), %s486_s4, 7  ;;  %p213_p13 = scmp.lt.s32.totalorder (!%p175_p10), %s488_s5, 31 }
  0x14   : > { %p218_p0 = scmp.lt.s32.totalorder (!%p175_p10), %s696_s16, 1 }
  0x16   : > { %s953_s4 = smov (!%p207_p12, %s486_s4), 7  ;;  %s955_s5 = smov (!%p213_p13, %s488_s5), 31  ;;  %vm226_vm0 = vcmask 523264  }
  0x17   : > { %s487_s6 = sshll.u32 %s953_s4, 3  ;;  %s489_s10 = sshll.u32 %s955_s5, 3 }
  0x18   : > { %s210_s9 = scalar_lea.vmem %s933_s0, %s487_s6  ;;  %s814_s21 = scalar_lea.vmem %s934_s1, %s489_s10 }
  0x19   : > { %v809_v0 = vld [vmem:[%s210_s9] sm:$0xff]  ;;  %v280_v2 = vld [vmem:[%s814_s21 + $0x78] sm:$0xff]  ;;  %v819_v3 = vld [vmem:[%s210_s9 + $0x8] sm:$0xff]  ;;  %s850_s24 = scalar_select %p218_p0, %s696_s16, 1 }
  0x1a   : > { %v224_v1 = vmul.f32 %v809_v0, %v809_v0  ;;  %490 = vmatpush.xpose.msk.msra.mxu0 %vm226_vm0, %v280_v2  ;;  %515 = vmatpush.xpose.msk.msra.mxu1 %vm226_vm0, %v280_v2  ;;  %v279_v5 = vld [vmem:[%s814_s21 + $0x70] sm:$0xff]  ;;  %v225_v6 = vmul.f32 %v819_v3, %v819_v3  ;;  %v278_v7 = vld [vmem:[%s814_s21 + $0x68] sm:$0xff]  ;;  %v277_v9 = vld [vmem:[%s814_s21 + $0x60] sm:$0xff]  ;;  %s514_s4 = sshll.u32 %s692_s15, 2  ;;  %s203_s5 = sand.u32 1, %s684_s13  }
  0x1b   : > { %v276_v10 = vld [vmem:[%s814_s21 + $0x58] sm:$0xff]  ;;  %v275_v11 = vld [vmem:[%s814_s21 + $0x50] sm:$0xff]  ;;  %v274_v12 = vld [vmem:[%s814_s21 + $0x48] sm:$0xff]  ;;  %s220_s29 = scalar_lea.vmem %s935_s2, %s850_s24  ;;  %s378_s6 = sadd.s32 %s696_s16, %s514_s4 }
  0x1c   : > { %v227_v4 = vsel %vm226_vm0, %v224_v1, 0.0  ;;  %v230_v8 = vsel %vm226_vm0, %v225_v6, 0.0  ;;  %v273_v13 = vld [vmem:[%s814_s21 + $0x40] sm:$0xff]  ;;  %v272_v14 = vld [vmem:[%s814_s21 + $0x38] sm:$0xff]  ;;  %v271_v15 = vld [vmem:[%s814_s21 + $0x30] sm:$0xff]  ;;  %s485_s7 = sshll.u32 %s203_s5, 4 }
  0x1d   : > { %228 = vadd.xlane.f32.xlu0 %v227_v4  ;;  %v270_v16 = vld [vmem:[%s814_s21 + $0x28] sm:$0xff]  ;;  %v269_v17 = vld [vmem:[%s814_s21 + $0x20] sm:$0xff]  ;;  %v268_v18 = vld [vmem:[%s814_s21 + $0x18] sm:$0xff]  ;;  %s511_s10 = sshll.u32 %s378_s6, 3  ;;  %s205_s27 = scalar_lea.vmem [#allocation2], %s485_s7 }
  0x1e   : > { %491 = vmatpush.xpose.msk.msra.mxu0 %vm226_vm0, %v279_v5  ;;  %516 = vmatpush.xpose.msk.msra.mxu1 %vm226_vm0, %v279_v5  ;;  %v267_v19 = vld [vmem:[%s814_s21 + $0x10] sm:$0xff]  ;;  %v266_v20 = vld [vmem:[%s814_s21 + $0x8] sm:$0xff]  ;;  %v265_v21 = vld [vmem:[%s814_s21] sm:$0xff]  ;;  %s380_s21 = scalar_lea.hbm %s936_s3, %s511_s10  ;;  %s381_s28 = sshll.u32 %s205_s27, 4  ;;  %s382_s28 = int_to_ptr.vmem [resolvable:$true] %s381_s28 }
  0x1f   : > { %v605_v52 = vld [vmem:[%s220_s29] ss:$0 sm:$0xff]  ;;  %s383_s15 = sshll.u32 %s380_s21, 4  ;;  %s367_s16 = scalar_lea.sflag [#allocation3], %s203_s5  ;;  %s384_s15 = int_to_ptr.hbm [resolvable:$true] %s383_s15 }
  0x20   : > { %s628_s24 = sshra.s32 %s384_s15, 4  ;;  %s634_s7 = scalar_lea.hbm %s936_s3, 128  ;;  %s629_s24 = int_to_ptr.hbm [resolvable:$true] %s628_s24 }
  0x21   : > { %s630_s29 = scalar_lea.hbm %s629_s24, 16  ;;  %p635_p5 = scmp.lt.s32.totalorder %s629_s24, %s936_s3 }
  0x22   : > { %492 = vmatpush.xpose.msk.msra.mxu0 %vm226_vm0, %v278_v7  ;;  %517 = vmatpush.xpose.msk.msra.mxu1 %vm226_vm0, %v278_v7  ;;  %p631_p1 = scmp.ne.s32.totalorder %s629_s24, %s630_s29  ;;  %p636_p6 = scmp.lt.s32.totalorder %s634_s7, %s630_s29 }
  0x24   : > { %p632_p2 = pnand %p631_p1, %p784_p3  ;;  %p637_p7 = por %p636_p6, %p635_p5 }
  0x25   : > { %231 = vadd.xlane.f32.xlu0 %v230_v8 }
  0x26   : > { %493 = vmatpush.xpose.msk.msra.mxu0 %vm226_vm0, %v277_v9  ;;  %518 = vmatpush.xpose.msk.msra.mxu1 %vm226_vm0, %v277_v9  ;;  %p633_p4 = pneg %p632_p2 }
  0x28   : > { %p638_p9 = pnand %p637_p7, %p633_p4 }
  0x2a   : > { %494 = vmatpush.xpose.msk.msra.mxu0 %vm226_vm0, %v276_v10  ;;  %519 = vmatpush.xpose.msk.msra.mxu1 %vm226_vm0, %v276_v10 }
  0x2e   : > { %495 = vmatpush.xpose.msk.msra.mxu0 %vm226_vm0, %v275_v11  ;;  %520 = vmatpush.xpose.msk.msra.mxu1 %vm226_vm0, %v275_v11 }
  0x32   : > { %496 = vmatpush.xpose.msk.msra.mxu0 %vm226_vm0, %v274_v12  ;;  %521 = vmatpush.xpose.msk.msra.mxu1 %vm226_vm0, %v274_v12 }
  0x36   : > { %497 = vmatpush.xpose.msk.msra.mxu0 %vm226_vm0, %v273_v13  ;;  %522 = vmatpush.xpose.msk.msra.mxu1 %vm226_vm0, %v273_v13 }
  0x3a   : > { %498 = vmatpush.xpose.msk.msra.mxu0 %vm226_vm0, %v272_v14  ;;  %523 = vmatpush.xpose.msk.msra.mxu1 %vm226_vm0, %v272_v14 }
  0x3e   : > { %499 = vmatpush.xpose.msk.msra.mxu0 %vm226_vm0, %v271_v15  ;;  %524 = vmatpush.xpose.msk.msra.mxu1 %vm226_vm0, %v271_v15 }
  0x42   : > { %500 = vmatpush.xpose.msk.msra.mxu0 %vm226_vm0, %v270_v16  ;;  %525 = vmatpush.xpose.msk.msra.mxu1 %vm226_vm0, %v270_v16 }
  0x46   : > { %501 = vmatpush.xpose.msk.msra.mxu0 %vm226_vm0, %v269_v17  ;;  %526 = vmatpush.xpose.msk.msra.mxu1 %vm226_vm0, %v269_v17 }
  0x4a   : > { %502 = vmatpush.xpose.msk.msra.mxu0 %vm226_vm0, %v268_v18  ;;  %527 = vmatpush.xpose.msk.msra.mxu1 %vm226_vm0, %v268_v18 }
  0x4e   : > { %503 = vmatpush.xpose.msk.msra.mxu0 %vm226_vm0, %v267_v19  ;;  %528 = vmatpush.xpose.msk.msra.mxu1 %vm226_vm0, %v267_v19 }
  0x52   : > { %504 = vmatpush.xpose.msk.msra.mxu0 %vm226_vm0, %v266_v20  ;;  %529 = vmatpush.xpose.msk.msra.mxu1 %vm226_vm0, %v266_v20 }
  0x56   : > { %505 = vmatpush.xpose.msk.msra.mxu0 %vm226_vm0, %v265_v21  ;;  %530 = vmatpush.xpose.msk.msra.mxu1 %vm226_vm0, %v265_v21 }
  0x90   : > { %v229_v22 = vpop.xlane.xlu0 %228 }
  0x91   : > { %606 = vrsqrt.f32 %v229_v22  ;;  %vm240_vm1 = vcmp.eq.f32.partialorder %v229_v22, inf  ;;  %v243_v34 = vand.u32 2147483648, %v229_v22  ;;  %vm242_vm2 = vcmp.eq.f32.partialorder %v229_v22, 0.0 }
  0x97   : > { %v607_v23 = vpop.eup %606 }
  0x98   : > { %v234_v24 = vmul.f32 %v607_v23, %v229_v22  ;;  %v232_v25 = vpop.xlane.xlu0 %231 }
  0x99   : > { %608 = vrsqrt.f32 %v232_v25  ;;  %vm252_vm3 = vcmp.eq.f32.partialorder %v232_v25, inf  ;;  %v255_v42 = vand.u32 2147483648, %v232_v25  ;;  %vm254_vm4 = vcmp.eq.f32.partialorder %v232_v25, 0.0 }
  0x9a   : > { %v235_v26 = vmul.f32 %v607_v23, %v234_v24 }
  0x9c   : > { %v236_v27 = vmul.f32 0.5, %v235_v26 }
  0x9e   : > { %v237_v28 = vsub.f32 1.5, %v236_v27 }
  0x9f   : > { %v609_v29 = vpop.eup %608 }
  0xa0   : > { %v246_v30 = vmul.f32 %v609_v29, %v232_v25  ;;  %v238_v31 = vmul.f32 %v607_v23, %v237_v28 }
  0xa2   : > { %v247_v32 = vmul.f32 %v609_v29, %v246_v30  ;;  %v239_v33 = vmul.f32 %v238_v31, %v229_v22 }
  0xa4   : > { %v248_v35 = vmul.f32 0.5, %v247_v32  ;;  %v241_v36 = vsel %vm240_vm1, %v229_v22, %v239_v33 }
  0xa5   : > { %v244_v37 = vsel %vm242_vm2, %v243_v34, %v241_v36 }
  0xa6   : > { %v249_v38 = vsub.f32 1.5, %v248_v35  ;;  %v257_v39 = vadd.f32 1.0, %v244_v37 }
  0xa8   : > { %v250_v40 = vmul.f32 %v609_v29, %v249_v38  ;;  %610 = vrcp.f32 %v257_v39 }
  0xaa   : > { %v251_v41 = vmul.f32 %v250_v40, %v232_v25 }
  0xac   : > { %v253_v43 = vsel %vm252_vm3, %v232_v25, %v251_v41 }
  0xad   : > { %v256_v44 = vsel %vm254_vm4, %v255_v42, %v253_v43 }
  0xae   : > { %v611_v45 = vpop.eup %610  ;;  %v258_v46 = vadd.f32 1.0, %v256_v44 }
  0xaf   : > { %v261_v47 = vmul.f32 16.0, %v611_v45 }
  0xb0   : > { %612 = vrcp.f32 %v258_v46 }
  0xb1   : > { %v263_v48 = vmul.f32 %v261_v47, %v809_v0 }
  0xb3   : > { %506 = vmatmul.msk.f32.vlgmr.msra.gmra.mxu0 %vm226_vm0, %v263_v48 }
  0xb6   : > { %v613_v49 = vpop.eup %612 }
  0xb7   : > { %v262_v50 = vmul.f32 16.0, %v613_v49 }
  0xb9   : > { %v264_v51 = vmul.f32 %v262_v50, %v819_v3 }
  0xbb   : > { %507 = vmatmul.msk.f32.vlgmr.msra.gmra.mxu1 %vm226_vm0, %v264_v51 }
 0x130   : > { %v352_v53 = vpop.f32.mrf.mxu0 }
 0x131   : > { %v362_v54 = vmul.f32 %v605_v52, %v352_v53 }
 0x133   : > { %364 = vst [vmem:[%s205_s27] sm:$0xff] %v362_v54 }
 0x138   : > { %v355_v55 = vpop.f32.mrf.mxu1 }
 0x139   : > { %v363_v56 = vmul.f32 %v605_v52, %v355_v55 }
 0x13b   : > { %365 = vst [vmem:[%s205_s27 + $0x8] sm:$0xff] %v363_v56 }
 0x13c   : > { %641 = shalt.err (!%p638_p9)
}
 0x13d   : > { %s710_s5 = smov 128   ;;  %s711_s10 = smov 256  }
 0x13e   : > { %s712_s11 = smov 8  }
 0x13f   : > { %531 = dma.vmem_to_hbm [thread:$0]  (%p784_p3), %s382_s28, 256, %s384_s15, %s367_s16, %s710_s5, %s711_s10, %s712_s11  }
 0x140 PF: > { %p537_p10 = scmp.ge.s32.totalorder %s708_s19, 2  ;;  %s398_s20 = sand.u32 1, %s680_s12  }
 0x141   : > { %s399_s21 = scalar_lea.sflag [#allocation3], %s398_s20 }
 0x142   : > { %p534_p11 = pnand %p537_p10, %p793_p8 }
 0x144   : > { %p535_p12 = pneg %p534_p11 }
 0x146   : > { %675 = dma.done.wait (%p535_p12), %s399_s21, 256  }
 0x147   : > { %677 = vsyncadd (%p535_p12), %s399_s21, 4294967040  ;;  %s16_s19 = sadd.s32 1, %s708_s19   ;;  %s939_s12 = smov %s684_s13 }
 0x148   : > { %p13_p13 = scmp.ge.s32.totalorder %s16_s19, 10   ;;  %s940_s13 = smov %s688_s14 }
 0x149   : > { %s941_s14 = smov %s802_s30  ;;  %s942_s15 = smov %s700_s17 }
 0x14a   : > { %s943_s16 = smov %s704_s18  ;;  %s944_s17 = smov %s947_s22 }
 0x14b   : > { %s945_s18 = smov %s951_s23  ;;  %15 = sbr.rel (!%p13_p13) target bundleno = 5 (0x5), region = 73 }
 0x150   :  { %405 = vsyncpa [#allocation3], 1 }
 0x151   :  { %407 = vsyncpa [#allocation3 + $0x1], 1 }

</bundles_post_ra>
